<compile_context>
chip_gen: v6e
topology: v6e:2x2x1
jax: 0.10.0
libtpu: 0.0.40
codegen_flags: <defaults>
</compile_context>

<pallas_src>
import functools

import jax
import jax.numpy as jnp
from jax.experimental import pallas as pl
from jax.experimental.pallas import tpu as pltpu

DIM = 4                      # feature dim of the diffusion model
HIDDEN = (5, 10, 20, 10, 5)  # hidden widths from the nn.Sequential
SIZES = (DIM,) + HIDDEN + (DIM,)
N_LAYERS = len(SIZES) - 1    # 6
PAD = 32                     # intermediate working width (max hidden 20 -> 32)
IN_ROWS = 8                  # input features (4) padded to one sublane group
OUT_ROWS = 8                 # output features (4) padded to one sublane group


def _ffn_kernel(x_ref, w_ref, b_ref, o_ref):
    """Fused 6-layer MLP on column-major activations.

    x_ref: (IN_ROWS, tile_b)     zero-padded activations, batch on lanes
    w_ref: (N_LAYERS*PAD, PAD)   zero-padded weights, PyTorch (out, in) layout
    b_ref: (N_LAYERS*PAD, 1)     zero-padded biases
    o_ref: (OUT_ROWS, tile_b)
    """
    x = x_ref[...].astype(jnp.float32)                     # (IN_ROWS, tile_b)
    # Widen to the 32-row working width in VMEM (cheap vreg copies); keeps all
    # matmuls at the (32,32)@(32,tile_b) shapes.
    zeros = jnp.zeros((PAD - IN_ROWS, x.shape[1]), jnp.float32)
    h = jnp.concatenate([x, zeros], axis=0)                # (PAD, tile_b)

    for k in range(N_LAYERS):                              # fully unrolled (6 layers)
        w = w_ref[k * PAD:(k + 1) * PAD, :]                # (PAD, PAD) static slice
        b = b_ref[k * PAD:(k + 1) * PAD, :]                # (PAD, 1)
        h = jnp.dot(w, h, preferred_element_type=jnp.float32) + b
        if k < N_LAYERS - 1:
            h = jax.nn.sigmoid(h)                          # EUP
    # Rows DIM..OUT_ROWS-1 are exactly 0 (zero weight rows + zero bias).
    o_ref[...] = h[:OUT_ROWS, :].astype(o_ref.dtype)


def init_params(key, dim=DIM):
    """nn.Linear-style init: uniform +/- 1/sqrt(fan_in).

    Returns a list of (W, b) with W in PyTorch (out, in) layout and b as (out,).
    """
    params = []
    for i in range(N_LAYERS):
        fan_in, fan_out = SIZES[i], SIZES[i + 1]
        key, kw, kb = jax.random.split(key, 3)
        bound = 1.0 / jnp.sqrt(jnp.float32(fan_in))
        w = jax.random.uniform(kw, (fan_out, fan_in), jnp.float32, -bound, bound)
        b = jax.random.uniform(kb, (fan_out,), jnp.float32, -bound, bound)
        params.append((w, b))
    return params


def pack_params(params):
    """Pack all layers into two zero-padded slabs for a single VMEM residency."""
    w_pack = jnp.zeros((N_LAYERS * PAD, PAD), jnp.float32)
    b_pack = jnp.zeros((N_LAYERS * PAD, 1), jnp.float32)
    for k, (w, b) in enumerate(params):
        out_f, in_f = w.shape
        w_pack = w_pack.at[k * PAD:k * PAD + out_f, :in_f].set(w.astype(jnp.float32))
        b_pack = b_pack.at[k * PAD:k * PAD + out_f, 0].set(b.astype(jnp.float32))
    return w_pack, b_pack


def _round_up(n, m):
    return ((n + m - 1) // m) * m


@functools.partial(jax.jit, static_argnames=("max_tile_b",))
def deep_ffn_forward(x, t, w_pack, b_pack, *, max_tile_b=2048):
    """Pallas forward pass.  `t` is unused (matches the PyTorch forward)."""
    del t
    B, dim = x.shape
    out_dtype = x.dtype

    # Lane-dense batch tiling: tiles are multiples of 128, up to max_tile_b.
    tile_b = min(max_tile_b, _round_up(B, 128))
    Bp = _round_up(B, tile_b)

    # Layout plumbing (XLA side): batch -> lanes, features -> sublanes
    # (padded only to 8 rows, not 32, to minimize HBM traffic).
    x_t = jnp.zeros((IN_ROWS, Bp), jnp.float32)
    x_t = x_t.at[:dim, :B].set(x.astype(jnp.float32).T)

    out_t = pl.pallas_call(
        _ffn_kernel,
        out_shape=jax.ShapeDtypeStruct((OUT_ROWS, Bp), out_dtype),
        grid_spec=pltpu.PrefetchScalarGridSpec(
            num_scalar_prefetch=0,
            grid=(Bp // tile_b,),
            in_specs=[
                pl.BlockSpec((IN_ROWS, tile_b), lambda i: (0, i)),
                pl.BlockSpec(w_pack.shape, lambda i: (0, 0)),  # grid-invariant
                pl.BlockSpec(b_pack.shape, lambda i: (0, 0)),  # grid-invariant
            ],
            out_specs=pl.BlockSpec((OUT_ROWS, tile_b), lambda i: (0, i)),
        ),
        compiler_params=pltpu.CompilerParams(
            dimension_semantics=("parallel",),  # v7x: shard batch across both TCs
        ),
    )(x_t, w_pack, b_pack)

    return out_t[:dim, :B].T.astype(out_dtype)


def reference_forward(x, params):
    """Pure-JAX reference (PyTorch semantics: y = x @ W.T + b)."""
    h = x.astype(jnp.float32)
    for i, (w, b) in enumerate(params):
        h = h @ w.T + b
        if i < N_LAYERS - 1:
            h = jax.nn.sigmoid(h)
    return h


if __name__ == "__main__":
    key = jax.random.PRNGKey(0)
    k_x, k_t, k_p, k_x2 = jax.random.split(key, 4)

    params = init_params(k_p, DIM)
    w_pack, b_pack = pack_params(params)

    # Small demo shape (B=16): single grid step.
    B = 16
    x = jax.random.normal(k_x, (B, DIM), jnp.float32)
    t = jax.random.uniform(k_t, (B, 1), jnp.float32)   # ignored, like PyTorch

    out = deep_ffn_forward(x, t, w_pack, b_pack)
    out = jax.block_until_ready(out)
    ref = reference_forward(x, params)
    assert out.shape == (B, DIM)
    assert jnp.allclose(out, ref, atol=1e-5, rtol=1e-5), "mismatch vs reference (B=16)"

    # Secondary check exercising the batch grid (>1 tile).
    B2 = 256
    x2 = jax.random.normal(k_x2, (B2, DIM), jnp.float32)
    out2 = deep_ffn_forward(x2, None, w_pack, b_pack, max_tile_b=128)
    out2 = jax.block_until_ready(out2)
    ref2 = reference_forward(x2, params)
    assert jnp.allclose(out2, ref2, atol=1e-5, rtol=1e-5), "mismatch vs reference (B=256)"

    print("KERNEL_OK")
</pallas_src>

<mosaic_0001>
module attributes {stable_mosaic.version = 11 : i64} {
  func.func @_ffn_kernel(%arg0: i32, %arg1: memref<8x128xf32, #tpu.memory_space<vmem>>, %arg2: memref<192x32xf32, #tpu.memory_space<vmem>>, %arg3: memref<192x1xf32, #tpu.memory_space<vmem>>, %arg4: memref<8x128xf32, #tpu.memory_space<vmem>>) attributes {dimension_semantics = [#tpu.dimension_semantics<parallel>], iteration_bounds = array<i64: 1>, scalar_prefetch = 0 : i64, scratch_operands = 0 : i64, tpu.core_type = #tpu.core_type<tc>, window_params = [{transform_indices = @transform_0, window_bounds = array<i64: 8, 128>}, {pipeline_mode = #tpu.pipeline_mode<synchronous>, transform_indices = @transform_1, window_bounds = array<i64: 192, 32>}, {pipeline_mode = #tpu.pipeline_mode<synchronous>, transform_indices = @transform_2, window_bounds = array<i64: 192, 1>}, {transform_indices = @transform_3, window_bounds = array<i64: 8, 128>}]} {
    %c0 = arith.constant 0 : index
    %c0_0 = arith.constant 0 : index
    %0 = vector.load %arg1[%c0, %c0_0] : memref<8x128xf32, #tpu.memory_space<vmem>>, vector<8x128xf32>
    %cst = arith.constant 0.000000e+00 : f32
    %1 = vector.broadcast %cst : f32 to vector<24x128xf32>
    %2 = tpu.concatenate %0, %1 in 0 : vector<8x128xf32>, vector<24x128xf32> -> vector<32x128xf32>
    %c0_1 = arith.constant 0 : index
    %c0_2 = arith.constant 0 : index
    %3 = vector.load %arg2[%c0_1, %c0_2] : memref<192x32xf32, #tpu.memory_space<vmem>>, vector<32x32xf32>
    %c0_3 = arith.constant 0 : index
    %c0_4 = arith.constant 0 : index
    %4 = vector.load %arg3[%c0_3, %c0_4] : memref<192x1xf32, #tpu.memory_space<vmem>>, vector<32x1xf32>
    %cst_5 = arith.constant dense<0.000000e+00> : vector<32x128xf32>
    %5 = tpu.matmul %3, %2, %cst_5 {dimension_numbers = #tpu.dot_dimension_numbers<[1], [0], [0], [1], [0, 0, 1, 1], [], []>} : vector<32x32xf32>, vector<32x128xf32>, vector<32x128xf32> -> vector<32x128xf32>
    %6 = vector.broadcast %4 : vector<32x1xf32> to vector<32x128xf32>
    %7 = arith.addf %5, %6 : vector<32x128xf32>
    %8 = arith.negf %7 : vector<32x128xf32>
    %9 = math.exp %8 : vector<32x128xf32>
    %cst_6 = arith.constant 1.000000e+00 : f32
    %10 = vector.broadcast %cst_6 : f32 to vector<32x128xf32>
    %11 = arith.addf %10, %9 : vector<32x128xf32>
    %12 = arith.divf %10, %11 : vector<32x128xf32>
    %c32 = arith.constant 32 : index
    %c0_7 = arith.constant 0 : index
    %13 = vector.load %arg2[%c32, %c0_7] : memref<192x32xf32, #tpu.memory_space<vmem>>, vector<32x32xf32>
    %c32_8 = arith.constant 32 : index
    %c0_9 = arith.constant 0 : index
    %14 = vector.load %arg3[%c32_8, %c0_9] : memref<192x1xf32, #tpu.memory_space<vmem>>, vector<32x1xf32>
    %cst_10 = arith.constant dense<0.000000e+00> : vector<32x128xf32>
    %15 = tpu.matmul %13, %12, %cst_10 {dimension_numbers = #tpu.dot_dimension_numbers<[1], [0], [0], [1], [0, 0, 1, 1], [], []>} : vector<32x32xf32>, vector<32x128xf32>, vector<32x128xf32> -> vector<32x128xf32>
    %16 = vector.broadcast %14 : vector<32x1xf32> to vector<32x128xf32>
    %17 = arith.addf %15, %16 : vector<32x128xf32>
    %18 = arith.negf %17 : vector<32x128xf32>
    %19 = math.exp %18 : vector<32x128xf32>
    %cst_11 = arith.constant 1.000000e+00 : f32
    %20 = vector.broadcast %cst_11 : f32 to vector<32x128xf32>
    %21 = arith.addf %20, %19 : vector<32x128xf32>
    %22 = arith.divf %20, %21 : vector<32x128xf32>
    %c64 = arith.constant 64 : index
    %c0_12 = arith.constant 0 : index
    %23 = vector.load %arg2[%c64, %c0_12] : memref<192x32xf32, #tpu.memory_space<vmem>>, vector<32x32xf32>
    %c64_13 = arith.constant 64 : index
    %c0_14 = arith.constant 0 : index
    %24 = vector.load %arg3[%c64_13, %c0_14] : memref<192x1xf32, #tpu.memory_space<vmem>>, vector<32x1xf32>
    %cst_15 = arith.constant dense<0.000000e+00> : vector<32x128xf32>
    %25 = tpu.matmul %23, %22, %cst_15 {dimension_numbers = #tpu.dot_dimension_numbers<[1], [0], [0], [1], [0, 0, 1, 1], [], []>} : vector<32x32xf32>, vector<32x128xf32>, vector<32x128xf32> -> vector<32x128xf32>
    %26 = vector.broadcast %24 : vector<32x1xf32> to vector<32x128xf32>
    %27 = arith.addf %25, %26 : vector<32x128xf32>
    %28 = arith.negf %27 : vector<32x128xf32>
    %29 = math.exp %28 : vector<32x128xf32>
    %cst_16 = arith.constant 1.000000e+00 : f32
    %30 = vector.broadcast %cst_16 : f32 to vector<32x128xf32>
    %31 = arith.addf %30, %29 : vector<32x128xf32>
    %32 = arith.divf %30, %31 : vector<32x128xf32>
    %c96 = arith.constant 96 : index
    %c0_17 = arith.constant 0 : index
    %33 = vector.load %arg2[%c96, %c0_17] : memref<192x32xf32, #tpu.memory_space<vmem>>, vector<32x32xf32>
    %c96_18 = arith.constant 96 : index
    %c0_19 = arith.constant 0 : index
    %34 = vector.load %arg3[%c96_18, %c0_19] : memref<192x1xf32, #tpu.memory_space<vmem>>, vector<32x1xf32>
    %cst_20 = arith.constant dense<0.000000e+00> : vector<32x128xf32>
    %35 = tpu.matmul %33, %32, %cst_20 {dimension_numbers = #tpu.dot_dimension_numbers<[1], [0], [0], [1], [0, 0, 1, 1], [], []>} : vector<32x32xf32>, vector<32x128xf32>, vector<32x128xf32> -> vector<32x128xf32>
    %36 = vector.broadcast %34 : vector<32x1xf32> to vector<32x128xf32>
    %37 = arith.addf %35, %36 : vector<32x128xf32>
    %38 = arith.negf %37 : vector<32x128xf32>
    %39 = math.exp %38 : vector<32x128xf32>
    %cst_21 = arith.constant 1.000000e+00 : f32
    %40 = vector.broadcast %cst_21 : f32 to vector<32x128xf32>
    %41 = arith.addf %40, %39 : vector<32x128xf32>
    %42 = arith.divf %40, %41 : vector<32x128xf32>
    %c128 = arith.constant 128 : index
    %c0_22 = arith.constant 0 : index
    %43 = vector.load %arg2[%c128, %c0_22] : memref<192x32xf32, #tpu.memory_space<vmem>>, vector<32x32xf32>
    %c128_23 = arith.constant 128 : index
    %c0_24 = arith.constant 0 : index
    %44 = vector.load %arg3[%c128_23, %c0_24] : memref<192x1xf32, #tpu.memory_space<vmem>>, vector<32x1xf32>
    %cst_25 = arith.constant dense<0.000000e+00> : vector<32x128xf32>
    %45 = tpu.matmul %43, %42, %cst_25 {dimension_numbers = #tpu.dot_dimension_numbers<[1], [0], [0], [1], [0, 0, 1, 1], [], []>} : vector<32x32xf32>, vector<32x128xf32>, vector<32x128xf32> -> vector<32x128xf32>
    %46 = vector.broadcast %44 : vector<32x1xf32> to vector<32x128xf32>
    %47 = arith.addf %45, %46 : vector<32x128xf32>
    %48 = arith.negf %47 : vector<32x128xf32>
    %49 = math.exp %48 : vector<32x128xf32>
    %cst_26 = arith.constant 1.000000e+00 : f32
    %50 = vector.broadcast %cst_26 : f32 to vector<32x128xf32>
    %51 = arith.addf %50, %49 : vector<32x128xf32>
    %52 = arith.divf %50, %51 : vector<32x128xf32>
    %c160 = arith.constant 160 : index
    %c0_27 = arith.constant 0 : index
    %53 = vector.load %arg2[%c160, %c0_27] : memref<192x32xf32, #tpu.memory_space<vmem>>, vector<32x32xf32>
    %c160_28 = arith.constant 160 : index
    %c0_29 = arith.constant 0 : index
    %54 = vector.load %arg3[%c160_28, %c0_29] : memref<192x1xf32, #tpu.memory_space<vmem>>, vector<32x1xf32>
    %cst_30 = arith.constant dense<0.000000e+00> : vector<32x128xf32>
    %55 = tpu.matmul %53, %52, %cst_30 {dimension_numbers = #tpu.dot_dimension_numbers<[1], [0], [0], [1], [0, 0, 1, 1], [], []>} : vector<32x32xf32>, vector<32x128xf32>, vector<32x128xf32> -> vector<32x128xf32>
    %56 = vector.broadcast %54 : vector<32x1xf32> to vector<32x128xf32>
    %57 = arith.addf %55, %56 : vector<32x128xf32>
    %58 = vector.extract_strided_slice %57 {offsets = [0, 0], sizes = [8, 128], strides = [1, 1]} : vector<32x128xf32> to vector<8x128xf32>
    %c0_31 = arith.constant 0 : index
    %c0_32 = arith.constant 0 : index
    %59 = vector.load %arg4[%c0_31, %c0_32] : memref<8x128xf32, #tpu.memory_space<vmem>>, vector<8x128xf32>
    tpu.vector_store %arg4[%c0_31, %c0_32], %58 {strides = array<i32>} : memref<8x128xf32, #tpu.memory_space<vmem>>, vector<8x128xf32>,
    return
  }
  func.func @transform_0(%arg0: i32) -> (i32, i32) {
    %c0_i32 = arith.constant 0 : i32
    %c0_i32_0 = arith.constant 0 : i32
    return %c0_i32, %arg0 : i32, i32
  }
  func.func @transform_1(%arg0: i32) -> (i32, i32) {
    %c0_i32 = arith.constant 0 : i32
    %c0_i32_0 = arith.constant 0 : i32
    %c0_i32_1 = arith.constant 0 : i32
    return %c0_i32, %c0_i32_0 : i32, i32
  }
  func.func @transform_2(%arg0: i32) -> (i32, i32) {
    %c0_i32 = arith.constant 0 : i32
    %c0_i32_0 = arith.constant 0 : i32
    %c0_i32_1 = arith.constant 0 : i32
    return %c0_i32, %c0_i32_0 : i32, i32
  }
  func.func @transform_3(%arg0: i32) -> (i32, i32) {
    %c0_i32 = arith.constant 0 : i32
    %c0_i32_0 = arith.constant 0 : i32
    return %c0_i32, %arg0 : i32, i32
  }
}

</mosaic_0001>

<bundles_post_ra>
// kernel: deep_ffn_forward.1
= control target key start
LH: loop header
LB: loop body
LE: loop exit
PB: predicated region body
PF: predicated region fallthrough
CT: control target
= control target key end

     0   :  { %vm43_vm0 = vcmask 261120   ;;  %v1143_v3 = vmov 0   ;;  %s1329_s0 = inlined_call_operand.vmem [shape: f32[8,128], index: 0, kind: input, shape index: {}]   ;;  %s1330_s1 = inlined_call_operand.vmem [shape: f32[192,32], index: 1, kind: input, shape index: {}]   ;;  %s1331_s2 = inlined_call_operand.vmem [shape: f32[192,1], index: 2, kind: input, shape index: {}]   ;;  %s1332_s3 = inlined_call_operand.vmem [shape: f32[8,128], index: 3, kind: output, shape index: {}]  }
   0x1   :  { %v14_v0 = vld [vmem:[%s1329_s0] sm:$0xff]  ;;  %v16_v2 = vld [vmem:[%s1330_s1 + $0x8] sm:$0xff]  ;;  %1061 = vset.pattern.permute.xlu0 %v1143_v3  ;;  %1062 = vset.pattern.permute.xlu1 %v1143_v3  ;;  %v17_v4 = vld [vmem:[%s1330_s1 + $0x10] sm:$0xff] }
   0x2   :  { %v15_v1 = vld [vmem:[%s1330_s1] sm:$0xff]  ;;  %974 = vmatprep.subr.mxu0 %v14_v0  ;;  %v22_v5 = vld [vmem:[%s1331_s2 + $0x18] sm:$0xff]  ;;  %v20_v6 = vld [vmem:[%s1331_s2 + $0x8] sm:$0xff] }
   0x3   :  { %976 = vmatprep.mubr.msk.f32.mxu0 %vm43_vm0, %v15_v1  ;;  %975 = vmatpush3.msra.mxu0 %v14_v0  ;;  %v21_v7 = vld [vmem:[%s1331_s2 + $0x10] sm:$0xff]  ;;  %v18_v8 = vld [vmem:[%s1330_s1 + $0x18] sm:$0xff]  ;;  %v19_v9 = vld [vmem:[%s1331_s2] sm:$0xff] }
   0x4   :  { %40 = vperm.xlu0 %1061, %v22_v5   ;;  %977 = vmatmul.mubr.msk.f32.vlgmr.msra.gmra.mxu0 %vm43_vm0, %v16_v2  ;;  %v172_v10 = vld [vmem:[%s1331_s2 + $0x38] sm:$0xff]  ;;  %v171_v11 = vld [vmem:[%s1331_s2 + $0x30] sm:$0xff]  ;;  %v170_v12 = vld [vmem:[%s1331_s2 + $0x28] sm:$0xff] }
   0x5   :  { %30 = vperm.xlu1 %1062, %v20_v6   ;;  %979 = vmatprep.mubr.msk.f32.mxu0 %vm43_vm0, %v17_v4  ;;  %v169_v13 = vld [vmem:[%s1331_s2 + $0x20] sm:$0xff]  ;;  %v321_v14 = vld [vmem:[%s1331_s2 + $0x58] sm:$0xff]  ;;  %v320_v15 = vld [vmem:[%s1331_s2 + $0x50] sm:$0xff] }
   0x6   :  { %v319_v16 = vld [vmem:[%s1331_s2 + $0x48] sm:$0xff]  ;;  %v318_v17 = vld [vmem:[%s1331_s2 + $0x40] sm:$0xff]  ;;  %v470_v18 = vld [vmem:[%s1331_s2 + $0x78] sm:$0xff] }
   0x7   :  { %v469_v19 = vld [vmem:[%s1331_s2 + $0x70] sm:$0xff]  ;;  %v468_v20 = vld [vmem:[%s1331_s2 + $0x68] sm:$0xff]  ;;  %v467_v21 = vld [vmem:[%s1331_s2 + $0x60] sm:$0xff] }
   0x8   :  { %35 = vperm.xlu0 %1061, %v21_v7   ;;  %980 = vmatmul.mubr.msk.f32.gmra.mxu0 %vm43_vm0, %v18_v8  ;;  %v619_v22 = vld [vmem:[%s1331_s2 + $0x98] sm:$0xff]  ;;  %v618_v23 = vld [vmem:[%s1331_s2 + $0x90] sm:$0xff]  ;;  %v617_v24 = vld [vmem:[%s1331_s2 + $0x88] sm:$0xff] }
   0x9   :  { %25 = vperm.xlu1 %1062, %v19_v9   ;;  %v616_v25 = vld [vmem:[%s1331_s2 + $0x80] sm:$0xff]  ;;  %v166_v56 = vld [vmem:[%s1330_s1 + $0x28] sm:$0xff]  ;;  %v167_v57 = vld [vmem:[%s1330_s1 + $0x30] sm:$0xff] }
   0xa   :  { %v765_v26 = vld [vmem:[%s1331_s2 + $0xa0] sm:$0xff]  ;;  %v168_v58 = vld [vmem:[%s1330_s1 + $0x38] sm:$0xff] }
   0xb   :  { %v165_v27 = vld [vmem:[%s1330_s1 + $0x20] sm:$0xff] }
   0xc   :  { %190 = vperm.xlu0 %1061, %v172_v10   ;;  %990 = vmatprep.mubr.msk.f32.mxu1 %vm43_vm0, %v165_v27  ;;  %v314_v59 = vld [vmem:[%s1330_s1 + $0x40] sm:$0xff] }
   0xd   :  { %185 = vperm.xlu1 %1062, %v171_v11   ;;  %1004 = vmatprep.mubr.msk.f32.mxu0 %vm43_vm0, %v314_v59  ;;  %v463_v27 = vld [vmem:[%s1330_s1 + $0x60] sm:$0xff] }
   0xe   :  { %v612_v59 = vld [vmem:[%s1330_s1 + $0x80] sm:$0xff] }
  0x10   :  { %180 = vperm.xlu0 %1061, %v170_v12  }
  0x11   :  { %175 = vperm.xlu1 %1062, %v169_v13  }
  0x14   :  { %339 = vperm.xlu0 %1061, %v321_v14  }
  0x15   :  { %334 = vperm.xlu1 %1062, %v320_v15  }
  0x18   :  { %329 = vperm.xlu0 %1061, %v319_v16  }
  0x19   :  { %324 = vperm.xlu1 %1062, %v318_v17  }
  0x1c   :  { %488 = vperm.xlu0 %1061, %v470_v18  }
  0x1d   :  { %483 = vperm.xlu1 %1062, %v469_v19  }
  0x20   :  { %478 = vperm.xlu0 %1061, %v468_v20  }
  0x21   :  { %473 = vperm.xlu1 %1062, %v467_v21  }
  0x24   :  { %637 = vperm.xlu0 %1061, %v619_v22  }
  0x25   :  { %632 = vperm.xlu1 %1062, %v618_v23  }
  0x28   :  { %627 = vperm.xlu0 %1061, %v617_v24   ;;  %v315_v24 = vld [vmem:[%s1330_s1 + $0x48] sm:$0xff] }
  0x29   :  { %622 = vperm.xlu1 %1062, %v616_v25   ;;  %v316_v25 = vld [vmem:[%s1330_s1 + $0x50] sm:$0xff] }
  0x2c   :  { %771 = vperm.xlu0 %1061, %v765_v26   ;;  %v317_v26 = vld [vmem:[%s1330_s1 + $0x58] sm:$0xff] }
  0x7f   :  { %v41_v29 = vpop.permute.xlu0 %40 }
  0x80   :  { %v31_v28 = vpop.permute.xlu1 %30 }
  0x83   :  { %v36_v38 = vpop.permute.xlu0 %35 }
  0x84   :  { %v26_v32 = vpop.permute.xlu1 %25 }
  0x87   :  { %v191_v60 = vpop.permute.xlu0 %190 }
  0x88   :  { %v186_v61 = vpop.permute.xlu1 %185 }
  0x8b   :  { %v181_v62 = vpop.permute.xlu0 %180 }
  0x8c   :  { %v176_v1 = vpop.permute.xlu1 %175 }
  0xc4   :  { %v978_v30 = vpop.f32.mrf.mxu0 }
  0xc5   :  { %v128_v31 = vadd.f32 %v978_v30, %v31_v28  ;;  %v340_v28 = vpop.permute.xlu0 %339 }
  0xc6   :  { %v122_v33 = vpop.f32.mrf.mxu0 }
  0xc7   :  { %v123_v34 = vadd.f32 %v122_v33, %v26_v32  ;;  %v890_v35 = vmul.f32 -1.442695, %v128_v31 }
  0xc8   :  { %v981_v36 = vpop.f32.mrf.mxu0 }
  0xc9   :  { %v138_v37 = vadd.f32 %v981_v36, %v41_v29  ;;  %v889_v39 = vmul.f32 -1.442695, %v123_v34  ;;  %1063 = vpow2.f32 %v890_v35  ;;  %v335_v29 = vpop.permute.xlu1 %334  ;;  %v330_v30 = vpop.permute.xlu0 %329 }
  0xca   :  { %v132_v40 = vpop.f32.mrf.mxu0 }
  0xcb   :  { %v892_v41 = vmul.f32 -1.442695, %v138_v37  ;;  %v133_v42 = vadd.f32 %v132_v40, %v36_v38 }
  0xcd   :  { %1065 = vpow2.f32 %v892_v41  ;;  %v891_v43 = vmul.f32 -1.442695, %v133_v42  ;;  %v325_v33 = vpop.permute.xlu1 %324 }
  0xce   :  { %1067 = vpow2.f32 %v889_v39 }
  0xcf   :  { %1069 = vpow2.f32 %v891_v43 }
  0xd6   :  { %v1064_v44 = vpop.eup %1063 }
  0xd7   :  { %v154_v49 = vadd.f32 1.0, %v1064_v44 }
  0xda   :  { %v1066_v45 = vpop.eup %1065 }
  0xdb   :  { %v1068_v46 = vpop.eup %1067  ;;  %v156_v47 = vadd.f32 1.0, %v1066_v45 }
  0xdc   :  { %v1070_v48 = vpop.eup %1069  ;;  %v153_v51 = vadd.f32 1.0, %v1068_v46 }
  0xdd   :  { %1071 = vrcp.f32 %v156_v47  ;;  %v155_v50 = vadd.f32 1.0, %v1070_v48 }
  0xdf   :  { %1073 = vrcp.f32 %v155_v50 }
  0xe0   :  { %1075 = vrcp.f32 %v154_v49 }
  0xe1   :  { %1077 = vrcp.f32 %v153_v51 }
  0xea   :  { %v1072_v52 = vpop.eup %1071 }
  0xeb   :  { %982 = vmatprep.subr.mxu1 %v1072_v52 }
  0xec   :  { %v1074_v53 = vpop.eup %1073  ;;  %983 = vmatpush3.msra.mxu1 %v1072_v52 }
  0xed   :  { %984 = vmatprep.subr.mxu1 %v1074_v53  ;;  %v1076_v54 = vpop.eup %1075 }
  0xee   :  { %985 = vmatpush3.msra.mxu1 %v1074_v53  ;;  %v1078_v55 = vpop.eup %1077 }
  0xef   :  { %986 = vmatprep.subr.mxu1 %v1076_v54 }
  0xf0   :  { %987 = vmatpush3.msra.mxu1 %v1076_v54 }
  0xf1   :  { %988 = vmatprep.subr.mxu1 %v1078_v55 }
  0xf2   :  { %989 = vmatpush3.msra.mxu1 %v1078_v55 }
  0xf3   :  { %991 = vmatmul.mubr.msk.f32.vlgmr.msra.gmra.mxu1 %vm43_vm0, %v166_v56  ;;  %v464_v56 = vld [vmem:[%s1330_s1 + $0x68] sm:$0xff] }
  0xf4   :  { %993 = vmatprep.mubr.msk.f32.mxu1 %vm43_vm0, %v167_v57  ;;  %v465_v57 = vld [vmem:[%s1330_s1 + $0x70] sm:$0xff] }
  0xf7   :  { %994 = vmatmul.mubr.msk.f32.gmra.mxu1 %vm43_vm0, %v168_v58  ;;  %v466_v58 = vld [vmem:[%s1330_s1 + $0x78] sm:$0xff] }
  0xf8   :  { %1018 = vmatprep.mubr.msk.f32.mxu1 %vm43_vm0, %v463_v27  ;;  %v761_v27 = vld [vmem:[%s1330_s1 + $0xa0] sm:$0xff] }
 0x1b3   :  { %v992_v63 = vpop.f32.mrf.mxu1 }
 0x1b4   :  { %v277_v0 = vadd.f32 %v992_v63, %v181_v62 }
 0x1b5   :  { %v271_v2 = vpop.f32.mrf.mxu1 }
 0x1b6   :  { %v272_v3 = vadd.f32 %v271_v2, %v176_v1  ;;  %v898_v4 = vmul.f32 -1.442695, %v277_v0 }
 0x1b7   :  { %v995_v5 = vpop.f32.mrf.mxu1 }
 0x1b8   :  { %v287_v6 = vadd.f32 %v995_v5, %v191_v60  ;;  %v897_v7 = vmul.f32 -1.442695, %v272_v3  ;;  %1079 = vpow2.f32 %v898_v4  ;;  %v489_v60 = vpop.permute.xlu0 %488 }
 0x1b9   :  { %v281_v8 = vpop.f32.mrf.mxu1 }
 0x1ba   :  { %v900_v9 = vmul.f32 -1.442695, %v287_v6  ;;  %v282_v10 = vadd.f32 %v281_v8, %v186_v61  ;;  %v484_v61 = vpop.permute.xlu1 %483 }
 0x1bc   :  { %1081 = vpow2.f32 %v900_v9  ;;  %v899_v11 = vmul.f32 -1.442695, %v282_v10  ;;  %v479_v62 = vpop.permute.xlu0 %478 }
 0x1bd   :  { %1083 = vpow2.f32 %v897_v7 }
 0x1be   :  { %1085 = vpow2.f32 %v899_v11  ;;  %v474_v1 = vpop.permute.xlu1 %473 }
 0x1c5   :  { %v1080_v12 = vpop.eup %1079 }
 0x1c6   :  { %v303_v17 = vadd.f32 1.0, %v1080_v12 }
 0x1c9   :  { %v1082_v13 = vpop.eup %1081 }
 0x1ca   :  { %v1084_v14 = vpop.eup %1083  ;;  %v305_v15 = vadd.f32 1.0, %v1082_v13 }
 0x1cb   :  { %v1086_v16 = vpop.eup %1085  ;;  %v302_v19 = vadd.f32 1.0, %v1084_v14 }
 0x1cc   :  { %1087 = vrcp.f32 %v305_v15  ;;  %v304_v18 = vadd.f32 1.0, %v1086_v16 }
 0x1ce   :  { %1089 = vrcp.f32 %v304_v18 }
 0x1cf   :  { %1091 = vrcp.f32 %v303_v17 }
 0x1d0   :  { %1093 = vrcp.f32 %v302_v19 }
 0x1d9   :  { %v1088_v20 = vpop.eup %1087 }
 0x1da   :  { %996 = vmatprep.subr.mxu0 %v1088_v20 }
 0x1db   :  { %v1090_v21 = vpop.eup %1089  ;;  %997 = vmatpush3.msra.mxu0 %v1088_v20 }
 0x1dc   :  { %998 = vmatprep.subr.mxu0 %v1090_v21  ;;  %v1092_v22 = vpop.eup %1091 }
 0x1dd   :  { %999 = vmatpush3.msra.mxu0 %v1090_v21  ;;  %v1094_v23 = vpop.eup %1093 }
 0x1de   :  { %1000 = vmatprep.subr.mxu0 %v1092_v22 }
 0x1df   :  { %1001 = vmatpush3.msra.mxu0 %v1092_v22 }
 0x1e0   :  { %1002 = vmatprep.subr.mxu0 %v1094_v23 }
 0x1e1   :  { %1003 = vmatpush3.msra.mxu0 %v1094_v23 }
 0x1e2   :  { %1005 = vmatmul.mubr.msk.f32.vlgmr.msra.gmra.mxu0 %vm43_vm0, %v315_v24  ;;  %v613_v24 = vld [vmem:[%s1330_s1 + $0x88] sm:$0xff] }
 0x1e3   :  { %1007 = vmatprep.mubr.msk.f32.mxu0 %vm43_vm0, %v316_v25  ;;  %v614_v25 = vld [vmem:[%s1330_s1 + $0x90] sm:$0xff] }
 0x1e6   :  { %1008 = vmatmul.mubr.msk.f32.gmra.mxu0 %vm43_vm0, %v317_v26  ;;  %v615_v26 = vld [vmem:[%s1330_s1 + $0x98] sm:$0xff] }
 0x1e7   :  { %1032 = vmatprep.mubr.msk.f32.mxu0 %vm43_vm0, %v612_v59 }
 0x2a2   :  { %v1006_v31 = vpop.f32.mrf.mxu0 }
 0x2a3   :  { %v426_v32 = vadd.f32 %v1006_v31, %v330_v30  ;;  %v633_v30 = vpop.permute.xlu1 %632 }
 0x2a4   :  { %v420_v34 = vpop.f32.mrf.mxu0 }
 0x2a5   :  { %v421_v35 = vadd.f32 %v420_v34, %v325_v33  ;;  %v906_v36 = vmul.f32 -1.442695, %v426_v32 }
 0x2a6   :  { %v1009_v37 = vpop.f32.mrf.mxu0 }
 0x2a7   :  { %v436_v38 = vadd.f32 %v1009_v37, %v340_v28  ;;  %v905_v39 = vmul.f32 -1.442695, %v421_v35  ;;  %1095 = vpow2.f32 %v906_v36  ;;  %v763_v28 = vld [vmem:[%s1330_s1 + $0xb0] sm:$0xff]  ;;  %v623_v34 = vpop.permute.xlu1 %622 }
 0x2a8   :  { %v430_v40 = vpop.f32.mrf.mxu0 }
 0x2a9   :  { %v908_v41 = vmul.f32 -1.442695, %v436_v38  ;;  %v431_v42 = vadd.f32 %v430_v40, %v335_v29  ;;  %v638_v29 = vpop.permute.xlu0 %637 }
 0x2ab   :  { %1097 = vpow2.f32 %v908_v41  ;;  %v907_v43 = vmul.f32 -1.442695, %v431_v42 }
 0x2ac   :  { %1099 = vpow2.f32 %v905_v39 }
 0x2ad   :  { %1101 = vpow2.f32 %v907_v43  ;;  %v628_v31 = vpop.permute.xlu0 %627 }
 0x2b4   :  { %v1096_v44 = vpop.eup %1095 }
 0x2b5   :  { %v452_v49 = vadd.f32 1.0, %v1096_v44 }
 0x2b8   :  { %v1098_v45 = vpop.eup %1097 }
 0x2b9   :  { %v1100_v46 = vpop.eup %1099  ;;  %v454_v47 = vadd.f32 1.0, %v1098_v45 }
 0x2ba   :  { %v1102_v48 = vpop.eup %1101  ;;  %v451_v51 = vadd.f32 1.0, %v1100_v46 }
 0x2bb   :  { %1103 = vrcp.f32 %v454_v47  ;;  %v453_v50 = vadd.f32 1.0, %v1102_v48 }
 0x2bd   :  { %1105 = vrcp.f32 %v453_v50 }
 0x2be   :  { %1107 = vrcp.f32 %v452_v49 }
 0x2bf   :  { %1109 = vrcp.f32 %v451_v51 }
 0x2c8   :  { %v1104_v52 = vpop.eup %1103 }
 0x2c9   :  { %1010 = vmatprep.subr.mxu1 %v1104_v52 }
 0x2ca   :  { %v1106_v53 = vpop.eup %1105  ;;  %1011 = vmatpush3.msra.mxu1 %v1104_v52 }
 0x2cb   :  { %1012 = vmatprep.subr.mxu1 %v1106_v53  ;;  %v1108_v54 = vpop.eup %1107 }
 0x2cc   :  { %1013 = vmatpush3.msra.mxu1 %v1106_v53  ;;  %v1110_v55 = vpop.eup %1109 }
 0x2cd   :  { %1014 = vmatprep.subr.mxu1 %v1108_v54 }
 0x2ce   :  { %1015 = vmatpush3.msra.mxu1 %v1108_v54 }
 0x2cf   :  { %1016 = vmatprep.subr.mxu1 %v1110_v55 }
 0x2d0   :  { %1017 = vmatpush3.msra.mxu1 %v1110_v55 }
 0x2d1   :  { %1019 = vmatmul.mubr.msk.f32.vlgmr.msra.gmra.mxu1 %vm43_vm0, %v464_v56 }
 0x2d2   :  { %1021 = vmatprep.mubr.msk.f32.mxu1 %vm43_vm0, %v465_v57  ;;  %v762_v57 = vld [vmem:[%s1330_s1 + $0xa8] sm:$0xff] }
 0x2d5   :  { %1022 = vmatmul.mubr.msk.f32.gmra.mxu1 %vm43_vm0, %v466_v58  ;;  %v764_v58 = vld [vmem:[%s1330_s1 + $0xb8] sm:$0xff] }
 0x2d6   :  { %1049 = vmatprep.mubr.msk.f32.mxu1 %vm43_vm0, %v763_v28 }
 0x391   :  { %v1020_v63 = vpop.f32.mrf.mxu1 }
 0x392   :  { %v575_v0 = vadd.f32 %v1020_v63, %v479_v62 }
 0x393   :  { %v569_v2 = vpop.f32.mrf.mxu1 }
 0x394   :  { %v570_v3 = vadd.f32 %v569_v2, %v474_v1  ;;  %v914_v4 = vmul.f32 -1.442695, %v575_v0 }
 0x395   :  { %v1023_v5 = vpop.f32.mrf.mxu1 }
 0x396   :  { %v585_v6 = vadd.f32 %v1023_v5, %v489_v60  ;;  %v913_v7 = vmul.f32 -1.442695, %v570_v3  ;;  %1111 = vpow2.f32 %v914_v4 }
 0x397   :  { %v579_v8 = vpop.f32.mrf.mxu1 }
 0x398   :  { %v916_v9 = vmul.f32 -1.442695, %v585_v6  ;;  %v580_v10 = vadd.f32 %v579_v8, %v484_v61  ;;  %v772_v61 = vpop.permute.xlu0 %771 }
 0x39a   :  { %1113 = vpow2.f32 %v916_v9  ;;  %v915_v11 = vmul.f32 -1.442695, %v580_v10 }
 0x39b   :  { %1115 = vpow2.f32 %v913_v7 }
 0x39c   :  { %1117 = vpow2.f32 %v915_v11 }
 0x3a3   :  { %v1112_v12 = vpop.eup %1111 }
 0x3a4   :  { %v601_v17 = vadd.f32 1.0, %v1112_v12 }
 0x3a7   :  { %v1114_v13 = vpop.eup %1113 }
 0x3a8   :  { %v1116_v14 = vpop.eup %1115  ;;  %v603_v15 = vadd.f32 1.0, %v1114_v13 }
 0x3a9   :  { %v1118_v16 = vpop.eup %1117  ;;  %v600_v19 = vadd.f32 1.0, %v1116_v14 }
 0x3aa   :  { %1119 = vrcp.f32 %v603_v15  ;;  %v602_v18 = vadd.f32 1.0, %v1118_v16 }
 0x3ac   :  { %1121 = vrcp.f32 %v602_v18 }
 0x3ad   :  { %1123 = vrcp.f32 %v601_v17 }
 0x3ae   :  { %1125 = vrcp.f32 %v600_v19 }
 0x3b7   :  { %v1120_v20 = vpop.eup %1119 }
 0x3b8   :  { %1024 = vmatprep.subr.mxu0 %v1120_v20 }
 0x3b9   :  { %v1122_v21 = vpop.eup %1121  ;;  %1025 = vmatpush3.msra.mxu0 %v1120_v20 }
 0x3ba   :  { %1026 = vmatprep.subr.mxu0 %v1122_v21  ;;  %v1124_v22 = vpop.eup %1123 }
 0x3bb   :  { %1027 = vmatpush3.msra.mxu0 %v1122_v21  ;;  %v1126_v23 = vpop.eup %1125 }
 0x3bc   :  { %1028 = vmatprep.subr.mxu0 %v1124_v22 }
 0x3bd   :  { %1029 = vmatpush3.msra.mxu0 %v1124_v22 }
 0x3be   :  { %1030 = vmatprep.subr.mxu0 %v1126_v23 }
 0x3bf   :  { %1031 = vmatpush3.msra.mxu0 %v1126_v23 }
 0x3c0   :  { %1033 = vmatmul.mubr.msk.f32.vlgmr.msra.gmra.mxu0 %vm43_vm0, %v613_v24 }
 0x3c1   :  { %1035 = vmatprep.mubr.msk.f32.mxu0 %vm43_vm0, %v614_v25 }
 0x3c4   :  { %1036 = vmatmul.mubr.msk.f32.gmra.mxu0 %vm43_vm0, %v615_v26 }
 0x3c5   :  { %1046 = vmatprep.mubr.msk.f32.mxu0 %vm43_vm0, %v761_v27 }
 0x480   :  { %v1034_v32 = vpop.f32.mrf.mxu0 }
 0x481   :  { %v724_v33 = vadd.f32 %v1034_v32, %v628_v31 }
 0x482   :  { %v718_v35 = vpop.f32.mrf.mxu0 }
 0x483   :  { %v719_v36 = vadd.f32 %v718_v35, %v623_v34  ;;  %v922_v37 = vmul.f32 -1.442695, %v724_v33 }
 0x484   :  { %v1037_v38 = vpop.f32.mrf.mxu0 }
 0x485   :  { %v734_v39 = vadd.f32 %v1037_v38, %v638_v29  ;;  %v921_v40 = vmul.f32 -1.442695, %v719_v36  ;;  %1127 = vpow2.f32 %v922_v37 }
 0x486   :  { %v728_v41 = vpop.f32.mrf.mxu0 }
 0x487   :  { %v924_v42 = vmul.f32 -1.442695, %v734_v39  ;;  %v729_v43 = vadd.f32 %v728_v41, %v633_v30 }
 0x489   :  { %1129 = vpow2.f32 %v924_v42  ;;  %v923_v44 = vmul.f32 -1.442695, %v729_v43 }
 0x48a   :  { %1131 = vpow2.f32 %v921_v40 }
 0x48b   :  { %1133 = vpow2.f32 %v923_v44 }
 0x492   :  { %v1128_v45 = vpop.eup %1127 }
 0x493   :  { %v750_v50 = vadd.f32 1.0, %v1128_v45 }
 0x496   :  { %v1130_v46 = vpop.eup %1129 }
 0x497   :  { %v1132_v47 = vpop.eup %1131  ;;  %v752_v48 = vadd.f32 1.0, %v1130_v46 }
 0x498   :  { %v1134_v49 = vpop.eup %1133  ;;  %v749_v52 = vadd.f32 1.0, %v1132_v47 }
 0x499   :  { %1135 = vrcp.f32 %v752_v48  ;;  %v751_v51 = vadd.f32 1.0, %v1134_v49 }
 0x49b   :  { %1137 = vrcp.f32 %v751_v51 }
 0x49c   :  { %1139 = vrcp.f32 %v750_v50 }
 0x49d   :  { %1141 = vrcp.f32 %v749_v52 }
 0x4a6   :  { %v1136_v53 = vpop.eup %1135 }
 0x4a7   :  { %1038 = vmatprep.subr.mxu0 %v1136_v53  ;;  %1052 = vmatprep.subr.mxu1 %v1136_v53 }
 0x4a8   :  { %v1138_v54 = vpop.eup %1137  ;;  %1039 = vmatpush3.msra.mxu0 %v1136_v53  ;;  %1056 = vmatpush3.msra.mxu1 %v1136_v53 }
 0x4a9   :  { %1040 = vmatprep.subr.mxu0 %v1138_v54  ;;  %1053 = vmatprep.subr.mxu1 %v1138_v54  ;;  %v1140_v55 = vpop.eup %1139 }
 0x4aa   :  { %1041 = vmatpush3.msra.mxu0 %v1138_v54  ;;  %1057 = vmatpush3.msra.mxu1 %v1138_v54  ;;  %v1142_v56 = vpop.eup %1141 }
 0x4ab   :  { %1042 = vmatprep.subr.mxu0 %v1140_v55  ;;  %1054 = vmatprep.subr.mxu1 %v1140_v55 }
 0x4ac   :  { %1043 = vmatpush3.msra.mxu0 %v1140_v55  ;;  %1058 = vmatpush3.msra.mxu1 %v1140_v55 }
 0x4ad   :  { %1044 = vmatprep.subr.mxu0 %v1142_v56  ;;  %1055 = vmatprep.subr.mxu1 %v1142_v56 }
 0x4ae   :  { %1045 = vmatpush3.msra.mxu0 %v1142_v56  ;;  %1059 = vmatpush3.msra.mxu1 %v1142_v56 }
 0x4af   :  { %1047 = vmatmul.mubr.msk.f32.vlgmr.msra.gmra.mxu0 %vm43_vm0, %v762_v57  ;;  %1050 = vmatmul.mubr.msk.f32.vlgmr.msra.gmra.mxu1 %vm43_vm0, %v764_v58 }
 0x56f   :  { %v1048_v59 = vpop.f32.mrf.mxu0  ;;  %v1051_v60 = vpop.f32.mrf.mxu1 }
 0x571   :  { %v864_v62 = vpop.f32.mrf.mxu0  ;;  %v873_v63 = vpop.f32.mrf.mxu1 }
 0x572   :  { %v865_v0 = vadd.f32 %v864_v62, %v772_v61 }
 0x574   :  { %880 = vst [vmem:[%s1332_s3] sm:$0xff] %v865_v0 }

</bundles_post_ra>
